<compile_context>
chip_gen: v6e
topology: v6e:2x2x1
jax: 0.10.0
libtpu: 0.0.40
codegen_flags: <defaults>
</compile_context>

<pallas_src>
import jax
import jax.numpy as jnp
from jax.experimental import pallas as pl
from jax.experimental.pallas import tpu as pltpu


def _round_up8(n):
    return -(-n // 8) * 8


def _mlp_softmax_kernel(x_ref, w1_ref, b1_ref, w2_ref, b2_ref, w3_ref, b3_ref,
                        o_ref):
    # Cast to the matmul dtype (bf16) inside the kernel: avoids a separate
    # wrapper-side HBM pass over x.
    x = x_ref[...].astype(w1_ref.dtype)

    # Layer 1: Linear(input_size -> hidden) + ReLU  (bf16 MXU, f32 accumulate)
    h1 = jnp.dot(x, w1_ref[...], preferred_element_type=jnp.float32) + b1_ref[...]
    h1 = jnp.maximum(h1, 0.0)

    # Layer 2: Linear(hidden -> hidden) + ReLU
    h2 = jnp.dot(h1.astype(w2_ref.dtype), w2_ref[...],
                 preferred_element_type=jnp.float32) + b2_ref[...]
    h2 = jnp.maximum(h2, 0.0)

    # Layer 3: Linear(hidden -> 8-lane padded head). Padded lanes have zero
    # weight columns and f32 -inf bias -> exp() == 0 -> softmax over real lanes.
    logits = jnp.dot(h2.astype(w3_ref.dtype), w3_ref[...],
                     preferred_element_type=jnp.float32) + b3_ref[...]

    # Numerically stable softmax over the last axis; divide -> EUP reciprocal.
    m = jnp.max(logits, axis=-1, keepdims=True)
    e = jnp.exp(logits - m)
    denom = jnp.sum(e, axis=-1, keepdims=True)      # >= 1 (max lane gives exp(0))
    o_ref[...] = (e * pl.reciprocal(denom, approx=True)).astype(o_ref.dtype)


def prepare_params(params, *, use_bf16=True, pad_out=8):
    """One-time (hoisted) weight preparation: pad the 5-wide head to 8 lanes and
    cast matmul operands to bf16. Biases stay f32 (padded bias lanes are -inf)."""
    mm_dtype = jnp.bfloat16 if use_bf16 else jnp.float32
    w1, b1 = params["w1"], params["b1"]
    w2, b2 = params["w2"], params["b2"]
    w3, b3 = params["w3"], params["b3"]
    hid = w1.shape[1]
    out_dim = w3.shape[1]
    assert out_dim <= pad_out

    w3p = jnp.zeros((hid, pad_out), mm_dtype).at[:, :out_dim].set(
        w3.astype(mm_dtype))
    b3p = jnp.full((1, pad_out), -jnp.inf, jnp.float32).at[:, :out_dim].set(
        jnp.reshape(b3, (1, -1)).astype(jnp.float32))

    return dict(
        w1=w1.astype(mm_dtype),
        b1=jnp.reshape(b1, (1, -1)).astype(jnp.float32),
        w2=w2.astype(mm_dtype),
        b2=jnp.reshape(b2, (1, -1)).astype(jnp.float32),
        w3p=w3p,
        b3p=b3p,
    )


def portfolio_recommender(x, prepared, *, out_dim=5, tile_b=2048):
    """x: (B, input_size) f32. prepared: output of prepare_params()."""
    w1, b1 = prepared["w1"], prepared["b1"]
    w2, b2 = prepared["w2"], prepared["b2"]
    w3p, b3p = prepared["w3p"], prepared["b3p"]

    B, in_dim = x.shape
    hid = w1.shape[1]
    pad_out = w3p.shape[1]

    # Batch tiling: sublane-aligned (multiple of 8); keep >= 2 grid steps when
    # the batch allows so the "parallel" axis shards across v7x's 2 TensorCores;
    # 2048 cap keeps the double-buffered working set inside v5e's 16 MiB scoped
    # VMEM default.
    rounded_b = max(8, _round_up8(B))
    tb = min(tile_b, rounded_b)
    if rounded_b >= 16:
        tb = min(tb, max(8, _round_up8(-(-rounded_b // 2))))
    tb = max(8, (tb // 8) * 8)
    grid = (pl.cdiv(B, tb),)   # ragged last block handled (rows >= B never read back)

    def resident(shape):
        # Weights / biases: same block every grid step -> stay VMEM-resident.
        return pl.BlockSpec(shape, lambda i: (0, 0))

    cost = pl.CostEstimate(
        flops=2 * B * (in_dim * hid + hid * hid + hid * pad_out),
        transcendentals=B * (pad_out + 1),
        bytes_accessed=(B * in_dim * 4                                 # x (f32)
                        + (in_dim * hid + hid * hid + hid * pad_out) * 2  # weights bf16
                        + (2 * hid + pad_out) * 4                      # biases f32
                        + B * pad_out * 2),                            # out bf16
    )

    out = pl.pallas_call(
        _mlp_softmax_kernel,
        out_shape=jax.ShapeDtypeStruct((B, pad_out), jnp.bfloat16),
        grid=grid,
        in_specs=[
            pl.BlockSpec((tb, in_dim), lambda i: (i, 0)),   # x tile (f32)
            resident((in_dim, hid)),                        # w1
            resident((1, hid)),                             # b1
            resident((hid, hid)),                           # w2
            resident((1, hid)),                             # b2
            resident((hid, pad_out)),                       # w3 (padded)
            resident((1, pad_out)),                         # b3 (padded, -inf)
        ],
        out_specs=pl.BlockSpec((tb, pad_out), lambda i: (i, 0)),
        compiler_params=pltpu.CompilerParams(
            dimension_semantics=("parallel",)),
        cost_estimate=cost,
    )(x, w1, b1, w2, b2, w3p, b3p)

    return out[:, :out_dim]


def init_params(key, input_size=6, hidden_size=64, out_size=5):
    """Deterministic init matching PyTorch nn.Linear default (U(-1/sqrt(fan_in), +))."""
    def linear_init(k, fan_in, fan_out):
        kw, kb = jax.random.split(k)
        bound = 1.0 / jnp.sqrt(jnp.float32(fan_in))
        # stored as (in, out) so kernel does x @ W
        w = jax.random.uniform(kw, (fan_in, fan_out), jnp.float32, -bound, bound)
        b = jax.random.uniform(kb, (1, fan_out), jnp.float32, -bound, bound)
        return w, b

    k1, k2, k3 = jax.random.split(key, 3)
    w1, b1 = linear_init(k1, input_size, hidden_size)
    w2, b2 = linear_init(k2, hidden_size, hidden_size)
    w3, b3 = linear_init(k3, hidden_size, out_size)
    return dict(w1=w1, b1=b1, w2=w2, b2=b2, w3=w3, b3=b3)


def _reference(x, p, use_bf16=True):
    """Pure-JAX reference mirroring the kernel's matmul precision."""
    cast = (lambda a: a.astype(jnp.bfloat16)) if use_bf16 else (lambda a: a)
    h1 = jnp.maximum(
        jnp.dot(cast(x), cast(p["w1"]), preferred_element_type=jnp.float32)
        + p["b1"], 0.0)
    h2 = jnp.maximum(
        jnp.dot(cast(h1), cast(p["w2"]), preferred_element_type=jnp.float32)
        + p["b2"], 0.0)
    logits = jnp.dot(cast(h2), cast(p["w3"]),
                     preferred_element_type=jnp.float32) + p["b3"]
    return jax.nn.softmax(logits, axis=1)


if __name__ == "__main__":
    key = jax.random.PRNGKey(0)
    kx, kp = jax.random.split(key)

    batch, input_size, hidden_size, out_size = 8, 6, 64, 5
    x = jax.random.normal(kx, (batch, input_size), jnp.float32)
    params = init_params(kp, input_size=input_size, hidden_size=hidden_size,
                         out_size=out_size)

    # One-time weight prep (padding + bf16 casts hoisted out of the hot path).
    prepared = prepare_params(params)

    out = portfolio_recommender(x, prepared, out_dim=out_size)
    out = jax.block_until_ready(out)

    ref = _reference(x, params)
    assert out.shape == (batch, out_size)
    out_f32 = out.astype(jnp.float32)
    # bf16 matmuls + bf16 output + approx reciprocal -> relaxed tolerances.
    assert jnp.allclose(out_f32, ref, atol=2e-2, rtol=2e-2)
    # softmax rows sum to ~1 (padded lanes contribute exactly 0)
    assert jnp.allclose(jnp.sum(out_f32, axis=1), jnp.ones((batch,)), atol=2e-2)

    print("KERNEL_OK")
</pallas_src>

<mosaic_0001>
module attributes {stable_mosaic.version = 11 : i64} {
  func.func @_mlp_softmax_kernel(%arg0: i32, %arg1: memref<8x6xf32, #tpu.memory_space<vmem>>, %arg2: memref<6x64xbf16, #tpu.memory_space<vmem>>, %arg3: memref<1x64xf32, #tpu.memory_space<vmem>>, %arg4: memref<64x64xbf16, #tpu.memory_space<vmem>>, %arg5: memref<1x64xf32, #tpu.memory_space<vmem>>, %arg6: memref<64x8xbf16, #tpu.memory_space<vmem>>, %arg7: memref<1x8xf32, #tpu.memory_space<vmem>>, %arg8: memref<8x8xbf16, #tpu.memory_space<vmem>>) attributes {dimension_semantics = [#tpu.dimension_semantics<parallel>], iteration_bounds = array<i64: 1>, scalar_prefetch = 0 : i64, scratch_operands = 0 : i64, tpu.core_type = #tpu.core_type<tc>, window_params = [{transform_indices = @transform_0, window_bounds = array<i64: 8, 6>}, {pipeline_mode = #tpu.pipeline_mode<synchronous>, transform_indices = @transform_1, window_bounds = array<i64: 6, 64>}, {pipeline_mode = #tpu.pipeline_mode<synchronous>, transform_indices = @transform_2, window_bounds = array<i64: 1, 64>}, {pipeline_mode = #tpu.pipeline_mode<synchronous>, transform_indices = @transform_3, window_bounds = array<i64: 64, 64>}, {pipeline_mode = #tpu.pipeline_mode<synchronous>, transform_indices = @transform_4, window_bounds = array<i64: 1, 64>}, {pipeline_mode = #tpu.pipeline_mode<synchronous>, transform_indices = @transform_5, window_bounds = array<i64: 64, 8>}, {pipeline_mode = #tpu.pipeline_mode<synchronous>, transform_indices = @transform_6, window_bounds = array<i64: 1, 8>}, {transform_indices = @transform_7, window_bounds = array<i64: 8, 8>}]} {
    %c0 = arith.constant 0 : index
    %c0_0 = arith.constant 0 : index
    %0 = vector.load %arg1[%c0, %c0_0] : memref<8x6xf32, #tpu.memory_space<vmem>>, vector<8x6xf32>
    %1 = arith.truncf %0 : vector<8x6xf32> to vector<8x6xbf16>
    %c0_1 = arith.constant 0 : index
    %c0_2 = arith.constant 0 : index
    %2 = vector.load %arg2[%c0_1, %c0_2] : memref<6x64xbf16, #tpu.memory_space<vmem>>, vector<6x64xbf16>
    %cst = arith.constant dense<0.000000e+00> : vector<8x64xf32>
    %3 = tpu.matmul %1, %2, %cst {dimension_numbers = #tpu.dot_dimension_numbers<[1], [0], [0], [1], [0, 0, 1, 1], [], []>} : vector<8x6xbf16>, vector<6x64xbf16>, vector<8x64xf32> -> vector<8x64xf32>
    %c0_3 = arith.constant 0 : index
    %c0_4 = arith.constant 0 : index
    %4 = vector.load %arg3[%c0_3, %c0_4] : memref<1x64xf32, #tpu.memory_space<vmem>>, vector<1x64xf32>
    %5 = vector.broadcast %4 : vector<1x64xf32> to vector<8x64xf32>
    %6 = arith.addf %3, %5 : vector<8x64xf32>
    %cst_5 = arith.constant 0.000000e+00 : f32
    %7 = vector.broadcast %cst_5 : f32 to vector<8x64xf32>
    %8 = arith.maximumf %6, %7 : vector<8x64xf32>
    %9 = arith.truncf %8 : vector<8x64xf32> to vector<8x64xbf16>
    %c0_6 = arith.constant 0 : index
    %c0_7 = arith.constant 0 : index
    %10 = vector.load %arg4[%c0_6, %c0_7] : memref<64x64xbf16, #tpu.memory_space<vmem>>, vector<64x64xbf16>
    %cst_8 = arith.constant dense<0.000000e+00> : vector<8x64xf32>
    %11 = tpu.matmul %9, %10, %cst_8 {dimension_numbers = #tpu.dot_dimension_numbers<[1], [0], [0], [1], [0, 0, 1, 1], [], []>} : vector<8x64xbf16>, vector<64x64xbf16>, vector<8x64xf32> -> vector<8x64xf32>
    %c0_9 = arith.constant 0 : index
    %c0_10 = arith.constant 0 : index
    %12 = vector.load %arg5[%c0_9, %c0_10] : memref<1x64xf32, #tpu.memory_space<vmem>>, vector<1x64xf32>
    %13 = vector.broadcast %12 : vector<1x64xf32> to vector<8x64xf32>
    %14 = arith.addf %11, %13 : vector<8x64xf32>
    %cst_11 = arith.constant 0.000000e+00 : f32
    %15 = vector.broadcast %cst_11 : f32 to vector<8x64xf32>
    %16 = arith.maximumf %14, %15 : vector<8x64xf32>
    %17 = arith.truncf %16 : vector<8x64xf32> to vector<8x64xbf16>
    %c0_12 = arith.constant 0 : index
    %c0_13 = arith.constant 0 : index
    %18 = vector.load %arg6[%c0_12, %c0_13] : memref<64x8xbf16, #tpu.memory_space<vmem>>, vector<64x8xbf16>
    %cst_14 = arith.constant dense<0.000000e+00> : vector<8x8xf32>
    %19 = tpu.matmul %17, %18, %cst_14 {dimension_numbers = #tpu.dot_dimension_numbers<[1], [0], [0], [1], [0, 0, 1, 1], [], []>} : vector<8x64xbf16>, vector<64x8xbf16>, vector<8x8xf32> -> vector<8x8xf32>
    %c0_15 = arith.constant 0 : index
    %c0_16 = arith.constant 0 : index
    %20 = vector.load %arg7[%c0_15, %c0_16] : memref<1x8xf32, #tpu.memory_space<vmem>>, vector<1x8xf32>
    %21 = vector.broadcast %20 : vector<1x8xf32> to vector<8x8xf32>
    %22 = arith.addf %19, %21 : vector<8x8xf32>
    %cst_17 = arith.constant dense<0xFF800000> : vector<8xf32>
    %23 = vector.multi_reduction <maximumf>, %22, %cst_17 [1] : vector<8x8xf32> to vector<8xf32>
    %24 = vector.shape_cast %23 : vector<8xf32> to vector<8x1xf32>
    %25 = vector.broadcast %24 : vector<8x1xf32> to vector<8x8xf32>
    %26 = arith.subf %22, %25 : vector<8x8xf32>
    %27 = math.exp %26 : vector<8x8xf32>
    %cst_18 = arith.constant dense<0.000000e+00> : vector<8xf32>
    %28 = vector.multi_reduction <add>, %27, %cst_18 [1] : vector<8x8xf32> to vector<8xf32>
    %29 = vector.shape_cast %28 : vector<8xf32> to vector<8x1xf32>
    %30 = tpu.reciprocal %29 {approx = true} : vector<8x1xf32> -> vector<8x1xf32>
    %31 = vector.broadcast %30 : vector<8x1xf32> to vector<8x8xf32>
    %32 = arith.mulf %27, %31 : vector<8x8xf32>
    %33 = arith.truncf %32 : vector<8x8xf32> to vector<8x8xbf16>
    %c0_19 = arith.constant 0 : index
    %c0_20 = arith.constant 0 : index
    %34 = vector.load %arg8[%c0_19, %c0_20] : memref<8x8xbf16, #tpu.memory_space<vmem>>, vector<8x8xbf16>
    tpu.vector_store %arg8[%c0_19, %c0_20], %33 {strides = array<i32>} : memref<8x8xbf16, #tpu.memory_space<vmem>>, vector<8x8xbf16>,
    return
  }
  func.func @transform_0(%arg0: i32) -> (i32, i32) {
    %c0_i32 = arith.constant 0 : i32
    %c0_i32_0 = arith.constant 0 : i32
    return %arg0, %c0_i32 : i32, i32
  }
  func.func @transform_1(%arg0: i32) -> (i32, i32) {
    %c0_i32 = arith.constant 0 : i32
    %c0_i32_0 = arith.constant 0 : i32
    %c0_i32_1 = arith.constant 0 : i32
    return %c0_i32, %c0_i32_0 : i32, i32
  }
  func.func @transform_2(%arg0: i32) -> (i32, i32) {
    %c0_i32 = arith.constant 0 : i32
    %c0_i32_0 = arith.constant 0 : i32
    %c0_i32_1 = arith.constant 0 : i32
    return %c0_i32, %c0_i32_0 : i32, i32
  }
  func.func @transform_3(%arg0: i32) -> (i32, i32) {
    %c0_i32 = arith.constant 0 : i32
    %c0_i32_0 = arith.constant 0 : i32
    %c0_i32_1 = arith.constant 0 : i32
    return %c0_i32, %c0_i32_0 : i32, i32
  }
  func.func @transform_4(%arg0: i32) -> (i32, i32) {
    %c0_i32 = arith.constant 0 : i32
    %c0_i32_0 = arith.constant 0 : i32
    %c0_i32_1 = arith.constant 0 : i32
    return %c0_i32, %c0_i32_0 : i32, i32
  }
  func.func @transform_5(%arg0: i32) -> (i32, i32) {
    %c0_i32 = arith.constant 0 : i32
    %c0_i32_0 = arith.constant 0 : i32
    %c0_i32_1 = arith.constant 0 : i32
    return %c0_i32, %c0_i32_0 : i32, i32
  }
  func.func @transform_6(%arg0: i32) -> (i32, i32) {
    %c0_i32 = arith.constant 0 : i32
    %c0_i32_0 = arith.constant 0 : i32
    %c0_i32_1 = arith.constant 0 : i32
    return %c0_i32, %c0_i32_0 : i32, i32
  }
  func.func @transform_7(%arg0: i32) -> (i32, i32) {
    %c0_i32 = arith.constant 0 : i32
    %c0_i32_0 = arith.constant 0 : i32
    return %arg0, %c0_i32 : i32, i32
  }
}

</mosaic_0001>

<bundles_post_ra>
// kernel: tpu_custom_call.1
= control target key start
LH: loop header
LB: loop body
LE: loop exit
PB: predicated region body
PF: predicated region fallthrough
CT: control target
= control target key end

     0   :  { %12 = vsyncpa [#allocation3], 0  ;;  %s541_s0 = inlined_call_operand.vmem [shape: f32[8,6], index: 0, kind: input, shape index: {}]   ;;  %s542_s1 = inlined_call_operand.hbm [shape: bf16[6,64], index: 1, kind: input, shape index: {}]   ;;  %s543_s2 = inlined_call_operand.vmem [shape: f32[1,64], index: 2, kind: input, shape index: {}]   ;;  %s544_s3 = inlined_call_operand.vmem [shape: bf16[64,64], index: 3, kind: input, shape index: {}]   ;;  %s545_s4 = inlined_call_operand.hbm [shape: f32[1,64], index: 4, kind: input, shape index: {}]   ;;  %s546_s5 = inlined_call_operand.vmem [shape: bf16[64,8], index: 5, kind: input, shape index: {}]   ;;  %s547_s6 = inlined_call_operand.vmem [shape: f32[1,8], index: 6, kind: input, shape index: {}]   ;;  %s548_s7 = inlined_call_operand.hbm [shape: bf16[8,8], index: 7, kind: output, shape index: {}]  }
   0x1   :  { %13 = vsyncpa [#allocation6], 0 }
   0x2   :  { %14 = vsyncpa [#allocation4], 0  ;;  %s449_s24 = smov [#allocation2]   ;;  %s450_s26 = smov [#allocation5]  }
   0x3   :  { %s23_s25 = sshll.u32 %s449_s24, 4  ;;  %s37_s27 = sshll.u32 %s450_s26, 4  ;;  %s24_s25 = int_to_ptr.vmem [resolvable:$true] %s23_s25  ;;  %s38_s27 = int_to_ptr.vmem [resolvable:$true] %s37_s27 }
   0x4   :  { %s391_s28 = scalar_lea.vmem %s24_s25, 64  ;;  %p396_p1 = scmp.lt.s32.totalorder %s24_s25, %s24_s25 }
   0x5   :  { %p392_p0 = scmp.ne.s32.totalorder %s24_s25, %s391_s28  ;;  %p397_p2 = scmp.lt.s32.totalorder %s391_s28, %s391_s28 }
   0x7   :  { %p398_p3 = por %p397_p2, %p396_p1 }
   0x9   :  { %p399_p4 = pnand %p398_p3, %p392_p0 }
   0xb   :  { %402 = shalt.err (!%p399_p4)
}
   0xc   :  { %26 = dma.hbm_to_vmem [thread:$0]  %s542_s1, 64, %s24_s25, [#allocation3]  }
   0xd   :  { %s411_s8 = scalar_lea.vmem %s38_s27, 16  ;;  %s415_s9 = scalar_lea.vmem %s38_s27, 32 }
   0xe   :  { %p412_p5 = scmp.ne.s32.totalorder %s38_s27, %s411_s8  ;;  %p416_p6 = scmp.lt.s32.totalorder %s38_s27, %s38_s27 }
   0xf   :  { %p417_p7 = scmp.lt.s32.totalorder %s415_s9, %s411_s8 }
  0x11   :  { %p418_p8 = por %p417_p7, %p416_p6 }
  0x13   :  { %p419_p9 = pnand %p418_p8, %p412_p5 }
  0x15   :  { %422 = shalt.err (!%p419_p9)
}
  0x16   :  { %40 = dma.hbm_to_vmem [thread:$0]  %s545_s4, 16, %s38_s27, [#allocation6]  }
  0x17   :  { %443 = dma.done.wait [#allocation3], 64  }
  0x18   :  { %444 = vsyncadd [#allocation3], 4294967232 }
  0x19   :  { %445 = dma.done.wait [#allocation6], 16  }
  0x1a   :  { %446 = vsyncadd [#allocation6], 4294967280  ;;  %v451_v0 = vmov 0.0   ;;  %vm452_vm0 = vmmov 0   ;;  %vm66_vm1 = vcmask 1042432   ;;  %v52_v2 = vld [vmem:[%s541_s0] sm:$0xff] }
  0x1b   :  { %336 = vmatprep.subr.bf16.mxu0 %v451_v0  ;;  %338 = vmatprep.mubr.msk.bf16.mxu0 %vm452_vm0, %v451_v0  ;;  %v54_v1 = vld [vmem:[#allocation2] sm:$0x7]  ;;  %v53_v4 = vpack.c.bf16 %v52_v2, %v52_v2  ;;  %v371_v5 = vld [vmem:[%s544_s3 + $0x18] sm:$0xff]   ;;  %vm62_vm2 = vcmask 48128   ;;  %v372_v6 = vld [vmem:[%s544_s3 + $0x10] sm:$0xff]   ;;  %vm151_vm3 = vcmask 523264  }
  0x1c   :  { %342 = vmatprep.subr.bf16.mxu1 %v451_v0  ;;  %350 = vmatprep.mubr.msk.bf16.mxu1 %vm452_vm0, %v451_v0  ;;  %v68_v3 = vsel %vm66_vm1, %v54_v1, 0  ;;  %v373_v7 = vld [vmem:[%s544_s3 + $0x8] sm:$0xff]   ;;  %v374_v8 = vld [vmem:[%s544_s3] sm:$0xff]   ;;  %v375_v9 = vld [vmem:[%s546_s5 + $0x18] sm:$0xff]   ;;  %vm279_vm4 = vcmask 64512   ;;  %vm292_vm5 = vcmask 60416  }
  0x1d   :  { %337 = vmatpush3.bf16.msra.mxu0 %v68_v3  ;;  %343 = vmatpush3.bf16.msra.mxu1 %v371_v5  ;;  %v376_v10 = vld [vmem:[%s546_s5 + $0x10] sm:$0xff]   ;;  %v310_v11 = vld [vmem:[%s543_s2] ss:$0 sm:$0xff]  ;;  %v377_v19 = vld [vmem:[%s546_s5 + $0x8] sm:$0xff]  }
  0x1e   :  { %354 = vmatprep.subr.bf16.mxu0 %v451_v0  ;;  %344 = vmatprep.subr.bf16.mxu1 %v451_v0  ;;  %v378_v20 = vld [vmem:[%s546_s5] sm:$0xff]   ;;  %s453_s5 = smov [#allocation7]  }
  0x1f   :  { %v312_v21 = vld [vmem:[#allocation5] ss:$0 sm:$0xff]  ;;  %v318_v29 = vld [vmem:[%s547_s6] ss:$0 sm:$0xff]  ;;  %s300_s6 = sshll.u32 %s453_s5, 4  ;;  %s301_s6 = int_to_ptr.vmem [resolvable:$true] %s300_s6 }
  0x20   :  { %339 = vmatmul.mubr.msk.bf16.vlgmr.msra.gmra.mxu0 %vm62_vm2, %v53_v4  ;;  %s423_s29 = scalar_lea.vmem %s301_s6, 64  ;;  %p428_p11 = scmp.lt.s32.totalorder %s301_s6, %s301_s6 }
  0x21   :  { %362 = vmatprep.mubr.msk.bf16.mxu0 %vm452_vm0, %v451_v0  ;;  %345 = vmatpush3.bf16.msra.mxu1 %v372_v6  ;;  %p424_p10 = scmp.ne.s32.totalorder %s301_s6, %s423_s29  ;;  %p429_p12 = scmp.lt.s32.totalorder %s423_s29, %s423_s29 }
  0x22   :  { %346 = vmatprep.subr.bf16.mxu1 %v451_v0  ;;  %355 = vmatpush3.bf16.msra.mxu0 %v375_v9 }
  0x23   :  { %356 = vmatprep.subr.bf16.mxu0 %v451_v0  ;;  %p430_p13 = por %p429_p12, %p428_p11 }
  0x25   :  { %347 = vmatpush3.bf16.msra.mxu1 %v373_v7  ;;  %p431_p0 = pnand %p430_p13, %p424_p10 }
  0x26   :  { %348 = vmatprep.subr.bf16.mxu1 %v451_v0  ;;  %357 = vmatpush3.bf16.msra.mxu0 %v376_v10 }
  0x27   :  { %358 = vmatprep.subr.bf16.mxu0 %v451_v0 }
  0x29   :  { %349 = vmatpush3.bf16.msra.mxu1 %v374_v8 }
  0x2a   :  { %359 = vmatpush3.bf16.msra.mxu0 %v377_v19 }
  0x2b   :  { %360 = vmatprep.subr.bf16.mxu0 %v451_v0 }
  0x2e   :  { %361 = vmatpush3.bf16.msra.mxu0 %v378_v20 }
  0xe0   :  { %v104_v12 = vpop.f32.mrf.mxu0 }
  0xe1   :  { %v105_v13 = vadd.f32 %v310_v11, %v104_v12 }
  0xe2   :  { %v340_v14 = vpop.f32.mrf.mxu0 }
  0xe3   :  { %v110_v15 = vmax.f32 %v105_v13, 0.0 }
  0xe4   :  { %v107_v16 = vpop.f32.mrf.mxu0 }
  0xe5   :  { %v111_v17 = vpack.c.bf16 %v110_v15, %v110_v15 }
  0xe6   :  { %v341_v18 = vpop.f32.mrf.mxu0 }
  0xe7   :  { %351 = vmatmul.mubr.msk.bf16.vlgmr.msra.gmra.mxu1 %vm151_vm3, %v111_v17 }
 0x1a7   :  { %v189_v22 = vpop.f32.mrf.mxu1 }
 0x1a8   :  { %v190_v23 = vadd.f32 %v312_v21, %v189_v22 }
 0x1a9   :  { %v352_v24 = vpop.f32.mrf.mxu1 }
 0x1aa   :  { %v195_v25 = vmax.f32 %v190_v23, 0.0 }
 0x1ab   :  { %v192_v26 = vpop.f32.mrf.mxu1 }
 0x1ac   :  { %v196_v27 = vpack.c.bf16 %v195_v25, %v195_v25 }
 0x1ad   :  { %v353_v28 = vpop.f32.mrf.mxu1 }
 0x1ae   :  { %363 = vmatmul.mubr.msk.bf16.vlgmr.msra.gmra.mxu0 %vm151_vm3, %v196_v27 }
 0x26e   :  { %v273_v30 = vpop.f32.mrf.mxu0 }
 0x26f   :  { %v274_v31 = vadd.f32 %v318_v29, %v273_v30 }
 0x270   :  { %v364_v32 = vpop.f32.mrf.mxu0 }
 0x271   :  { %v280_v33 = vsel %vm279_vm4, %v274_v31, -inf }
 0x272   :  { %281 = vmax.xlane.f32.xlu0 %v280_v33  ;;  %v276_v34 = vpop.f32.mrf.mxu0 }
 0x274   :  { %v365_v35 = vpop.f32.mrf.mxu0 }
 0x2fb   :  { %v282_v36 = vpop.xlane.xlu0 %281 }
 0x2fc   :  { %v283_v37 = vsub.f32 %v274_v31, %v282_v36 }
 0x2fe   :  { %v284_v38 = vmul.f32 1.442695, %v283_v37 }
 0x300   :  { %379 = vpow2.f32 %v284_v38 }
 0x30d   :  { %v380_v39 = vpop.eup %379 }
 0x30e   :  { %v286_v40 = vsel %vm279_vm4, %v380_v39, 0.0 }
 0x30f   :  { %287 = vadd.xlane.f32.xlu0 %v286_v40 }
 0x398   :  { %v288_v41 = vpop.xlane.xlu0 %287 }
 0x399   :  { %381 = vrcp.f32 %v288_v41 }
 0x3a6   :  { %v382_v42 = vpop.eup %381 }
 0x3a7   :  { %v290_v43 = vmul.f32 %v382_v42, %v380_v39 }
 0x3a9   :  { %v291_v44 = vpack.c.bf16 %v290_v43, %v290_v43 }
 0x3ab   :  { %293 = vst.msk [vmem:[#allocation7] sm:$0xf] %vm292_vm5, %v291_v44 }
 0x3ac   :  { %434 = shalt.err (!%p431_p0)
}
 0x3ad   :  { %303 = dma.vmem_to_hbm [thread:$0]  %s301_s6, 64, %s548_s7, [#allocation4]  }
 0x3ae   :  { %447 = dma.done.wait [#allocation4], 64  }
 0x3af   :  { %448 = vsyncadd [#allocation4], 4294967232 }
 0x3b0   :  { %307 = vsyncpa [#allocation3], 1 }
 0x3b1   :  { %308 = vsyncpa [#allocation6], 1 }
 0x3b2   :  { %309 = vsyncpa [#allocation4], 1 }

</bundles_post_ra>
